<compile_context>
chip_gen: v7x
topology: tpu7x:2x2x1
jax: 0.10.0
libtpu: 0.0.40
codegen_flags: <defaults>
</compile_context>

<pallas_src>
import jax
import jax.numpy as jnp
from jax.experimental import pallas as pl
from jax.experimental.pallas import tpu as pltpu


# ----------------------------------------------------------------------------
# Kernel
# ----------------------------------------------------------------------------
def critic_kernel(obs_ref, act_ref,
                  wo_ref, bo_ref, wa_ref, ba_ref,
                  w2t_ref, w2b_ref, b2_ref, w3_ref, b3_ref,
                  out_ref):
    cdt = wo_ref.dtype          # MXU operand dtype (f32 or bf16)

    # First layer: two small matmuls, f32 accumulation, f32 bias/ReLU.
    x_o = jnp.dot(obs_ref[...].astype(cdt), wo_ref[...],
                  preferred_element_type=jnp.float32)
    x_o = jnp.maximum(x_o + bo_ref[...], 0.0)
    x_a = jnp.dot(act_ref[...].astype(cdt), wa_ref[...],
                  preferred_element_type=jnp.float32)
    x_a = jnp.maximum(x_a + ba_ref[...], 0.0)

    # fc_2 on the split weight:  cat(x_o, x_a) @ W2 == x_o@W2_top + x_a@W2_bot
    h2 = (jnp.dot(x_o.astype(cdt), w2t_ref[...],
                  preferred_element_type=jnp.float32)
          + jnp.dot(x_a.astype(cdt), w2b_ref[...],
                    preferred_element_type=jnp.float32))
    h2 = jnp.maximum(h2 + b2_ref[...], 0.0)

    # Output layer (N=1), computed LANE-DENSE:  (1, H2) x (tb, H2)^T -> (1, tb)
    row = jax.lax.dot_general(
        w3_ref[...], h2,
        dimension_numbers=(((1,), (1,)), ((), ())),   # contract both dim 1
        preferred_element_type=jnp.float32) + b3_ref[...]
    out_ref[...] = row[None]                          # (1, 1, tb) dense store


# ----------------------------------------------------------------------------
# Wrapper
# ----------------------------------------------------------------------------
def critic_forward(obs, action, packed_params, *, block_b=1024):
    """obs: [B, num_obs], action: [B, num_action] -> value: [B, 1] (float32)."""
    wo, bo, wa, ba, w2t, w2b, b2, w3_row, b3 = packed_params
    B, num_obs = obs.shape
    num_action = action.shape[1]
    H1 = wo.shape[1]
    H2 = w2t.shape[1]

    # ---- batch-tile selection ----------------------------------------------
    # Sublane-packing alignment follows the *streamed* input dtype
    # (bf16 packs 2 rows / sublane -> round rows to 16; int8 -> 32).
    in_itemsize = min(jnp.dtype(obs.dtype).itemsize,
                      jnp.dtype(action.dtype).itemsize)
    row_align = {1: 32, 2: 16}.get(in_itemsize, 8)

    if B <= 2 * row_align:
        tb = B                                       # single full-array tile
    else:
        # Cap at ceil(B/2) so there are always >=2 tiles: lets
        # dimension_semantics=("parallel",) feed both v7x TensorCores.
        tb = min(block_b, pl.cdiv(B, 2))
        if tb >= 128:
            tb = (tb // 128) * 128                   # lane-friendly tiles
        else:
            tb = max(row_align, (tb // row_align) * row_align)
    num_tiles = pl.cdiv(B, tb)

    # Deeper buffering on the streamed inputs hides DMA latency behind the
    # tiny per-tile compute (only when there are enough tiles to use it).
    in_depth = max(2, min(3, num_tiles))

    def stream_spec(ncols):
        return pl.BlockSpec((tb, ncols), lambda i: (i, 0),
                            pipeline_mode=pl.Buffered(in_depth))

    def resident(shape):
        # Same block every grid step -> weights/biases stay VMEM resident.
        return pl.BlockSpec(shape, lambda i: (0, 0))

    out_spec = pl.BlockSpec((1, 1, tb), lambda i: (i, 0, 0))

    # ---- advisory cost estimate (matches the real I/O plan) -----------------
    param_bytes = sum(int(p.size) * jnp.dtype(p.dtype).itemsize
                      for p in packed_params)
    flops = int(2 * B * (num_obs * H1 + num_action * H1 + 2 * H1 * H2 + H2))
    bytes_accessed = int(
        B * num_obs * jnp.dtype(obs.dtype).itemsize        # obs read once
        + B * num_action * jnp.dtype(action.dtype).itemsize  # action read once
        + num_tiles * tb * 4                                # lane-dense f32 out
        + param_bytes)

    out_padded = pl.pallas_call(
        critic_kernel,
        out_shape=jax.ShapeDtypeStruct((num_tiles, 1, tb), jnp.float32),
        grid=(num_tiles,),
        in_specs=[
            stream_spec(num_obs), stream_spec(num_action),
            resident(wo.shape), resident(bo.shape),
            resident(wa.shape), resident(ba.shape),
            resident(w2t.shape), resident(w2b.shape), resident(b2.shape),
            resident(w3_row.shape), resident(b3.shape),
        ],
        out_specs=out_spec,
        compiler_params=pltpu.CompilerParams(
            dimension_semantics=("parallel",)),             # megacore on v7x
        cost_estimate=pl.CostEstimate(flops=flops, transcendentals=0,
                                      bytes_accessed=bytes_accessed),
    )(obs, action, wo, bo, wa, ba, w2t, w2b, b2, w3_row, b3)

    # Tiny (num_tiles * tb) slab -> (B, 1).  Negligible: B floats.
    return out_padded.reshape(-1)[:B].reshape(B, 1)


# ----------------------------------------------------------------------------
# Parameter construction (PyTorch-style uniform(-1/sqrt(fan_in), +...) init)
# ----------------------------------------------------------------------------
def init_layers(key, num_obs, num_action, num_hidden_1, num_hidden_2):
    """Returns per-layer (W, b) with W stored as [in_features, out_features]."""
    ks = jax.random.split(key, 8)

    def lin(kw, kb, fan_in, fan_out):
        bound = 1.0 / (fan_in ** 0.5)
        w = jax.random.uniform(kw, (fan_in, fan_out), jnp.float32, -bound, bound)
        b = jax.random.uniform(kb, (1, fan_out), jnp.float32, -bound, bound)
        return w, b

    fc_o = lin(ks[0], ks[1], num_obs, num_hidden_1)
    fc_a = lin(ks[2], ks[3], num_action, num_hidden_1)
    fc_2 = lin(ks[4], ks[5], num_hidden_1 * 2, num_hidden_2)
    out = lin(ks[6], ks[7], num_hidden_2, 1)
    return fc_o, fc_a, fc_2, out


def pack_params(layers, compute_dtype=jnp.bfloat16):
    """Pack layer params into the kernel layout.

    fc_2's weight is split into the half fed by ReLU(fc_o) and the half fed
    by ReLU(fc_a) so the kernel never needs a concatenated activation.
    Matmul operands are stored in `compute_dtype` (bf16 is MXU-native on
    v5e/v6e/v7x and halves weight DMA); biases and the final-layer row stay
    f32 so every elementwise op is f32 (v5e-safe).
    """
    (wo, bo), (wa, ba), (w2, b2), (w3, b3) = layers
    h1 = wo.shape[1]
    return (wo.astype(compute_dtype), bo.astype(jnp.float32),
            wa.astype(compute_dtype), ba.astype(jnp.float32),
            w2[:h1].astype(compute_dtype), w2[h1:].astype(compute_dtype),
            b2.astype(jnp.float32),
            w3.T.astype(jnp.float32),        # (1, H2) row for the final dot
            b3.astype(jnp.float32))          # (1, 1)


def critic_reference(obs, action, layers):
    """Pure-JAX reference implementing the original (unfused) module math."""
    (wo, bo), (wa, ba), (w2, b2), (w3, b3) = layers
    x_o = jnp.maximum(obs @ wo + bo, 0.0)
    x_a = jnp.maximum(action @ wa + ba, 0.0)
    x = jnp.concatenate([x_o, x_a], axis=1)
    h = jnp.maximum(x @ w2 + b2, 0.0)
    return h @ w3 + b3


# ----------------------------------------------------------------------------
# Demo / self-test
# ----------------------------------------------------------------------------
if __name__ == "__main__":
    batch = 8
    num_obs = 16
    num_action = 8
    num_hidden_1 = 32
    num_hidden_2 = 32

    key = jax.random.PRNGKey(0)
    k_obs, k_act, k_params = jax.random.split(key, 3)

    obs = jax.random.normal(k_obs, (batch, num_obs), jnp.float32)
    action = jax.random.normal(k_act, (batch, num_action), jnp.float32)
    layers = init_layers(k_params, num_obs, num_action, num_hidden_1, num_hidden_2)

    # 1) small batch, f32 weights, single tile
    packed_f32 = pack_params(layers, compute_dtype=jnp.float32)
    value = jax.block_until_ready(critic_forward(obs, action, packed_f32))
    ref = critic_reference(obs, action, layers)
    assert value.shape == (batch, 1)
    assert jnp.allclose(value, ref, atol=1e-5, rtol=1e-5)

    # 2) large batch: exercises the batch grid, Buffered(3) input pipelining
    #    and the >=2-tile megacore split (f32 streaming).
    big_b = 1024
    k_obs2, k_act2 = jax.random.split(jax.random.PRNGKey(1))
    obs2 = jax.random.normal(k_obs2, (big_b, num_obs), jnp.float32)
    act2 = jax.random.normal(k_act2, (big_b, num_action), jnp.float32)
    value2 = jax.block_until_ready(
        critic_forward(obs2, act2, packed_f32, block_b=256))
    ref2 = critic_reference(obs2, act2, layers)
    assert value2.shape == (big_b, 1)
    assert jnp.allclose(value2, ref2, atol=1e-4, rtol=1e-4)

    # 3) bf16 weights + bf16-stored activations (halves streamed HBM bytes,
    #    biggest relative win on v5e) with a ragged last tile (B % tb != 0);
    #    accumulation stays f32.
    rag_b = 1000
    packed_bf16 = pack_params(layers, compute_dtype=jnp.bfloat16)
    obs3 = obs2[:rag_b].astype(jnp.bfloat16)
    act3 = act2[:rag_b].astype(jnp.bfloat16)
    value3 = jax.block_until_ready(critic_forward(obs3, act3, packed_bf16))
    ref3 = critic_reference(obs3.astype(jnp.float32),
                            act3.astype(jnp.float32), layers)
    assert value3.shape == (rag_b, 1)
    assert jnp.allclose(value3, ref3, atol=2e-1, rtol=2e-1)

    print("KERNEL_OK")
</pallas_src>

<mosaic_0001>
module attributes {stable_mosaic.version = 11 : i64} {
  func.func @critic_kernel(%arg0: i32, %arg1: memref<8x16xf32, #tpu.memory_space<vmem>>, %arg2: memref<8x8xf32, #tpu.memory_space<vmem>>, %arg3: memref<16x32xf32, #tpu.memory_space<vmem>>, %arg4: memref<1x32xf32, #tpu.memory_space<vmem>>, %arg5: memref<8x32xf32, #tpu.memory_space<vmem>>, %arg6: memref<1x32xf32, #tpu.memory_space<vmem>>, %arg7: memref<32x32xf32, #tpu.memory_space<vmem>>, %arg8: memref<32x32xf32, #tpu.memory_space<vmem>>, %arg9: memref<1x32xf32, #tpu.memory_space<vmem>>, %arg10: memref<1x32xf32, #tpu.memory_space<vmem>>, %arg11: memref<1x1xf32, #tpu.memory_space<vmem>>, %arg12: memref<1x1x8xf32, #tpu.memory_space<vmem>>) attributes {dimension_semantics = [#tpu.dimension_semantics<parallel>], iteration_bounds = array<i64: 1>, scalar_prefetch = 0 : i64, scratch_operands = 0 : i64, tpu.core_type = #tpu.core_type<tc>, window_params = [{pipeline_mode = #tpu.pipeline_mode<double_buffered>, transform_indices = @transform_0, window_bounds = array<i64: 8, 16>}, {pipeline_mode = #tpu.pipeline_mode<double_buffered>, transform_indices = @transform_1, window_bounds = array<i64: 8, 8>}, {pipeline_mode = #tpu.pipeline_mode<synchronous>, transform_indices = @transform_2, window_bounds = array<i64: 16, 32>}, {pipeline_mode = #tpu.pipeline_mode<synchronous>, transform_indices = @transform_3, window_bounds = array<i64: 1, 32>}, {pipeline_mode = #tpu.pipeline_mode<synchronous>, transform_indices = @transform_4, window_bounds = array<i64: 8, 32>}, {pipeline_mode = #tpu.pipeline_mode<synchronous>, transform_indices = @transform_5, window_bounds = array<i64: 1, 32>}, {pipeline_mode = #tpu.pipeline_mode<synchronous>, transform_indices = @transform_6, window_bounds = array<i64: 32, 32>}, {pipeline_mode = #tpu.pipeline_mode<synchronous>, transform_indices = @transform_7, window_bounds = array<i64: 32, 32>}, {pipeline_mode = #tpu.pipeline_mode<synchronous>, transform_indices = @transform_8, window_bounds = array<i64: 1, 32>}, {pipeline_mode = #tpu.pipeline_mode<synchronous>, transform_indices = @transform_9, window_bounds = array<i64: 1, 32>}, {pipeline_mode = #tpu.pipeline_mode<synchronous>, transform_indices = @transform_10, window_bounds = array<i64: 1, 1>}, {transform_indices = @transform_11, window_bounds = array<i64: 1, 1, 8>}]} {
    %c0 = arith.constant 0 : index
    %c0_0 = arith.constant 0 : index
    %0 = vector.load %arg1[%c0, %c0_0] : memref<8x16xf32, #tpu.memory_space<vmem>>, vector<8x16xf32>
    %c0_1 = arith.constant 0 : index
    %c0_2 = arith.constant 0 : index
    %1 = vector.load %arg3[%c0_1, %c0_2] : memref<16x32xf32, #tpu.memory_space<vmem>>, vector<16x32xf32>
    %cst = arith.constant dense<0.000000e+00> : vector<8x32xf32>
    %2 = tpu.matmul %0, %1, %cst {dimension_numbers = #tpu.dot_dimension_numbers<[1], [0], [0], [1], [0, 0, 1, 1], [], []>} : vector<8x16xf32>, vector<16x32xf32>, vector<8x32xf32> -> vector<8x32xf32>
    %c0_3 = arith.constant 0 : index
    %c0_4 = arith.constant 0 : index
    %3 = vector.load %arg4[%c0_3, %c0_4] : memref<1x32xf32, #tpu.memory_space<vmem>>, vector<1x32xf32>
    %4 = vector.broadcast %3 : vector<1x32xf32> to vector<8x32xf32>
    %5 = arith.addf %2, %4 : vector<8x32xf32>
    %cst_5 = arith.constant 0.000000e+00 : f32
    %6 = vector.broadcast %cst_5 : f32 to vector<8x32xf32>
    %7 = arith.maximumf %5, %6 : vector<8x32xf32>
    %c0_6 = arith.constant 0 : index
    %c0_7 = arith.constant 0 : index
    %8 = vector.load %arg2[%c0_6, %c0_7] : memref<8x8xf32, #tpu.memory_space<vmem>>, vector<8x8xf32>
    %c0_8 = arith.constant 0 : index
    %c0_9 = arith.constant 0 : index
    %9 = vector.load %arg5[%c0_8, %c0_9] : memref<8x32xf32, #tpu.memory_space<vmem>>, vector<8x32xf32>
    %cst_10 = arith.constant dense<0.000000e+00> : vector<8x32xf32>
    %10 = tpu.matmul %8, %9, %cst_10 {dimension_numbers = #tpu.dot_dimension_numbers<[1], [0], [0], [1], [0, 0, 1, 1], [], []>} : vector<8x8xf32>, vector<8x32xf32>, vector<8x32xf32> -> vector<8x32xf32>
    %c0_11 = arith.constant 0 : index
    %c0_12 = arith.constant 0 : index
    %11 = vector.load %arg6[%c0_11, %c0_12] : memref<1x32xf32, #tpu.memory_space<vmem>>, vector<1x32xf32>
    %12 = vector.broadcast %11 : vector<1x32xf32> to vector<8x32xf32>
    %13 = arith.addf %10, %12 : vector<8x32xf32>
    %cst_13 = arith.constant 0.000000e+00 : f32
    %14 = vector.broadcast %cst_13 : f32 to vector<8x32xf32>
    %15 = arith.maximumf %13, %14 : vector<8x32xf32>
    %c0_14 = arith.constant 0 : index
    %c0_15 = arith.constant 0 : index
    %16 = vector.load %arg7[%c0_14, %c0_15] : memref<32x32xf32, #tpu.memory_space<vmem>>, vector<32x32xf32>
    %cst_16 = arith.constant dense<0.000000e+00> : vector<8x32xf32>
    %17 = tpu.matmul %7, %16, %cst_16 {dimension_numbers = #tpu.dot_dimension_numbers<[1], [0], [0], [1], [0, 0, 1, 1], [], []>} : vector<8x32xf32>, vector<32x32xf32>, vector<8x32xf32> -> vector<8x32xf32>
    %c0_17 = arith.constant 0 : index
    %c0_18 = arith.constant 0 : index
    %18 = vector.load %arg8[%c0_17, %c0_18] : memref<32x32xf32, #tpu.memory_space<vmem>>, vector<32x32xf32>
    %cst_19 = arith.constant dense<0.000000e+00> : vector<8x32xf32>
    %19 = tpu.matmul %15, %18, %cst_19 {dimension_numbers = #tpu.dot_dimension_numbers<[1], [0], [0], [1], [0, 0, 1, 1], [], []>} : vector<8x32xf32>, vector<32x32xf32>, vector<8x32xf32> -> vector<8x32xf32>
    %20 = arith.addf %17, %19 : vector<8x32xf32>
    %c0_20 = arith.constant 0 : index
    %c0_21 = arith.constant 0 : index
    %21 = vector.load %arg9[%c0_20, %c0_21] : memref<1x32xf32, #tpu.memory_space<vmem>>, vector<1x32xf32>
    %22 = vector.broadcast %21 : vector<1x32xf32> to vector<8x32xf32>
    %23 = arith.addf %20, %22 : vector<8x32xf32>
    %cst_22 = arith.constant 0.000000e+00 : f32
    %24 = vector.broadcast %cst_22 : f32 to vector<8x32xf32>
    %25 = arith.maximumf %23, %24 : vector<8x32xf32>
    %c0_23 = arith.constant 0 : index
    %c0_24 = arith.constant 0 : index
    %26 = vector.load %arg10[%c0_23, %c0_24] : memref<1x32xf32, #tpu.memory_space<vmem>>, vector<1x32xf32>
    %cst_25 = arith.constant dense<0.000000e+00> : vector<1x8xf32>
    %27 = tpu.matmul %26, %25, %cst_25 {dimension_numbers = #tpu.dot_dimension_numbers<[1], [1], [0], [0], [0, 0, 1, 0], [], []>} : vector<1x32xf32>, vector<8x32xf32>, vector<1x8xf32> -> vector<1x8xf32>
    %c0_26 = arith.constant 0 : index
    %c0_27 = arith.constant 0 : index
    %28 = vector.load %arg11[%c0_26, %c0_27] : memref<1x1xf32, #tpu.memory_space<vmem>>, vector<1x1xf32>
    %29 = vector.broadcast %28 : vector<1x1xf32> to vector<1x8xf32>
    %30 = arith.addf %27, %29 : vector<1x8xf32>
    %31 = vector.shape_cast %30 : vector<1x8xf32> to vector<1x1x8xf32>
    %c0_28 = arith.constant 0 : index
    %c0_29 = arith.constant 0 : index
    %c0_30 = arith.constant 0 : index
    %32 = vector.load %arg12[%c0_28, %c0_29, %c0_30] : memref<1x1x8xf32, #tpu.memory_space<vmem>>, vector<1x1x8xf32>
    tpu.vector_store %arg12[%c0_28, %c0_29, %c0_30], %31 {strides = array<i32>} : memref<1x1x8xf32, #tpu.memory_space<vmem>>, vector<1x1x8xf32>,
    return
  }
  func.func @transform_0(%arg0: i32) -> (i32, i32) {
    %c0_i32 = arith.constant 0 : i32
    %c0_i32_0 = arith.constant 0 : i32
    return %arg0, %c0_i32 : i32, i32
  }
  func.func @transform_1(%arg0: i32) -> (i32, i32) {
    %c0_i32 = arith.constant 0 : i32
    %c0_i32_0 = arith.constant 0 : i32
    return %arg0, %c0_i32 : i32, i32
  }
  func.func @transform_2(%arg0: i32) -> (i32, i32) {
    %c0_i32 = arith.constant 0 : i32
    %c0_i32_0 = arith.constant 0 : i32
    %c0_i32_1 = arith.constant 0 : i32
    return %c0_i32, %c0_i32_0 : i32, i32
  }
  func.func @transform_3(%arg0: i32) -> (i32, i32) {
    %c0_i32 = arith.constant 0 : i32
    %c0_i32_0 = arith.constant 0 : i32
    %c0_i32_1 = arith.constant 0 : i32
    return %c0_i32, %c0_i32_0 : i32, i32
  }
  func.func @transform_4(%arg0: i32) -> (i32, i32) {
    %c0_i32 = arith.constant 0 : i32
    %c0_i32_0 = arith.constant 0 : i32
    %c0_i32_1 = arith.constant 0 : i32
    return %c0_i32, %c0_i32_0 : i32, i32
  }
  func.func @transform_5(%arg0: i32) -> (i32, i32) {
    %c0_i32 = arith.constant 0 : i32
    %c0_i32_0 = arith.constant 0 : i32
    %c0_i32_1 = arith.constant 0 : i32
    return %c0_i32, %c0_i32_0 : i32, i32
  }
  func.func @transform_6(%arg0: i32) -> (i32, i32) {
    %c0_i32 = arith.constant 0 : i32
    %c0_i32_0 = arith.constant 0 : i32
    %c0_i32_1 = arith.constant 0 : i32
    return %c0_i32, %c0_i32_0 : i32, i32
  }
  func.func @transform_7(%arg0: i32) -> (i32, i32) {
    %c0_i32 = arith.constant 0 : i32
    %c0_i32_0 = arith.constant 0 : i32
    %c0_i32_1 = arith.constant 0 : i32
    return %c0_i32, %c0_i32_0 : i32, i32
  }
  func.func @transform_8(%arg0: i32) -> (i32, i32) {
    %c0_i32 = arith.constant 0 : i32
    %c0_i32_0 = arith.constant 0 : i32
    %c0_i32_1 = arith.constant 0 : i32
    return %c0_i32, %c0_i32_0 : i32, i32
  }
  func.func @transform_9(%arg0: i32) -> (i32, i32) {
    %c0_i32 = arith.constant 0 : i32
    %c0_i32_0 = arith.constant 0 : i32
    %c0_i32_1 = arith.constant 0 : i32
    return %c0_i32, %c0_i32_0 : i32, i32
  }
  func.func @transform_10(%arg0: i32) -> (i32, i32) {
    %c0_i32 = arith.constant 0 : i32
    %c0_i32_0 = arith.constant 0 : i32
    %c0_i32_1 = arith.constant 0 : i32
    return %c0_i32, %c0_i32_0 : i32, i32
  }
  func.func @transform_11(%arg0: i32) -> (i32, i32, i32) {
    %c0_i32 = arith.constant 0 : i32
    %c0_i32_0 = arith.constant 0 : i32
    %c0_i32_1 = arith.constant 0 : i32
    return %arg0, %c0_i32, %c0_i32_0 : i32, i32, i32
  }
}

</mosaic_0001>

<bundles_post_ra>
// kernel: tpu_custom_call.1
= control target key start
LH: loop header
LB: loop body
LE: loop exit
PB: predicated region body
PF: predicated region fallthrough
CT: control target
= control target key end

     0   :  { %s957_s0 = inlined_call_operand.hbm [shape: f32[8,16], index: 0, kind: input, shape index: {}]   ;;  %s958_s1 = inlined_call_operand.hbm [shape: f32[8,8], index: 1, kind: input, shape index: {}]   ;;  %s959_s2 = inlined_call_operand.hbm [shape: f32[16,32], index: 2, kind: input, shape index: {}]   ;;  %s960_s3 = inlined_call_operand.vmem [shape: f32[1,32], index: 3, kind: input, shape index: {}]   ;;  %s961_s4 = inlined_call_operand.vmem [shape: f32[8,32], index: 4, kind: input, shape index: {}]   ;;  %s962_s5 = inlined_call_operand.vmem [shape: f32[1,32], index: 5, kind: input, shape index: {}]   ;;  %s963_s6 = inlined_call_operand.hbm [shape: f32[32,32], index: 6, kind: input, shape index: {}]   ;;  %s964_s7 = inlined_call_operand.hbm [shape: f32[32,32], index: 7, kind: input, shape index: {}]   ;;  %s965_s8 = inlined_call_operand.vmem [shape: f32[1,32], index: 8, kind: input, shape index: {}]   ;;  %s966_s9 = inlined_call_operand.vmem [shape: f32[1,32], index: 9, kind: input, shape index: {}]   ;;  %s967_s10 = inlined_call_operand.<no memory space> [shape: f32[1,1], index: 10, kind: input, shape index: {}]   ;;  %s968_s11 = inlined_call_operand.hbm [shape: f32[1,1,8], index: 11, kind: output, shape index: {}]  }
   0x1   :  { %v16_v0 = vstv %s967_s10 }
   0x2   :  { %17 = vst [vmem:[#allocation2] sm:$0x1] %v16_v0 }
   0x3   :  { %18 = vsyncpa [#allocation4], 0 }
   0x4   :  { %19 = vsyncpa [#allocation7], 0 }
   0x5   :  { %20 = vsyncpa [#allocation10], 0 }
   0x6   :  { %21 = vsyncpa [#allocation5], 0  ;;  %s777_s19 = smov [#allocation6]   ;;  %s637_s23 = scalar_lea.hbm %s958_s1, 128 }
   0x7   :  { %s38_s20 = sshll.u32 %s777_s19, 4  ;;  %p638_p0 = scmp.ne.s32.totalorder %s958_s1, %s637_s23  ;;  %s39_s20 = int_to_ptr.vmem [resolvable:$true] %s38_s20 }
   0x8   :  { %p641_p1 = scmp.lt.u32.totalorder %s637_s23, %s958_s1 }
   0xa   :  { %p643_p2 = pnand %p641_p1, %p638_p0 }
   0xc   :  { %646 = shalt.err (!%p643_p2)
}
   0xd   :  { %s647_s10 = scalar_lea.vmem %s39_s20, 128  ;;  %p652_p4 = scmp.lt.s32.totalorder %s39_s20, %s39_s20 }
   0xe   :  { %p648_p3 = scmp.ne.s32.totalorder %s39_s20, %s647_s10  ;;  %p653_p5 = scmp.lt.s32.totalorder %s647_s10, %s647_s10 }
  0x10   :  { %p654_p6 = por %p653_p5, %p652_p4 }
  0x12   :  { %p655_p7 = pnand %p654_p6, %p648_p3 }
  0x14   :  { %658 = shalt.err (!%p655_p7)
}
  0x15   :  { %41 = dma.hbm_to_vmem [thread:$0]  %s958_s1, 128, %s39_s20, [#allocation7]  }
  0x16   :  { %s778_s30 = smov [#allocation9]   ;;  %s779_s13 = smov [#allocation3]  }
  0x17   :  { %s65_s12 = sshll.u32 %s778_s30, 4  ;;  %s28_s14 = sshll.u32 %s779_s13, 4  ;;  %s66_s12 = int_to_ptr.vmem [resolvable:$true] %s65_s12  ;;  %s29_s14 = int_to_ptr.vmem [resolvable:$true] %s28_s14 }
  0x18   :  { %s659_s17 = scalar_lea.hbm %s963_s6, 512 }
  0x19   :  { %p660_p8 = scmp.ne.s32.totalorder %s963_s6, %s659_s17  ;;  %p663_p9 = scmp.lt.u32.totalorder %s659_s17, %s963_s6 }
  0x1b   :  { %p665_p10 = pnand %p663_p9, %p660_p8 }
  0x1d   :  { %668 = shalt.err (!%p665_p10)
}
  0x1e   :  { %s669_s1 = scalar_lea.vmem %s66_s12, 512  ;;  %p674_p12 = scmp.lt.s32.totalorder %s66_s12, %s66_s12 }
  0x1f   :  { %p670_p11 = scmp.ne.s32.totalorder %s66_s12, %s669_s1  ;;  %p675_p13 = scmp.lt.s32.totalorder %s669_s1, %s669_s1 }
  0x21   :  { %p676_p0 = por %p675_p13, %p674_p12 }
  0x23   :  { %p677_p1 = pnand %p676_p0, %p670_p11 }
  0x25   :  { %680 = shalt.err (!%p677_p1)
}
  0x26   :  { %s780_s20 = smov 128   ;;  %s781_s23 = smov 8  }
  0x27   :  { %71 = dma.hbm_to_vmem [thread:$0]  %s963_s6, 512, %s66_s12, [#allocation10], %s780_s20, %s780_s20, %s781_s23  }
  0x28   :  { %s681_s10 = scalar_lea.hbm %s957_s0, 128 }
  0x29   :  { %p682_p2 = scmp.ne.s32.totalorder %s957_s0, %s681_s10  ;;  %p685_p3 = scmp.lt.u32.totalorder %s681_s10, %s957_s0 }
  0x2b   :  { %p687_p4 = pnand %p685_p3, %p682_p2 }
  0x2d   :  { %690 = shalt.err (!%p687_p4)
}
  0x2e   :  { %s691_s15 = scalar_lea.vmem %s29_s14, 128  ;;  %p696_p6 = scmp.lt.s32.totalorder %s29_s14, %s29_s14 }
  0x2f   :  { %p692_p5 = scmp.ne.s32.totalorder %s29_s14, %s691_s15  ;;  %p697_p7 = scmp.lt.s32.totalorder %s691_s15, %s691_s15 }
  0x31   :  { %p698_p8 = por %p697_p7, %p696_p6 }
  0x33   :  { %p699_p9 = pnand %p698_p8, %p692_p5 }
  0x35   :  { %702 = shalt.err (!%p699_p9)
}
  0x36   :  { %31 = dma.hbm_to_vmem [thread:$0]  %s957_s0, 128, %s29_s14, [#allocation4]  }
  0x37   :  { %s782_s16 = smov [#allocation8]   ;;  %s783_s18 = smov [#allocation11]  }
  0x38   :  { %s47_s17 = sshll.u32 %s782_s16, 4  ;;  %s77_s19 = sshll.u32 %s783_s18, 4  ;;  %s48_s17 = int_to_ptr.vmem [resolvable:$true] %s47_s17  ;;  %s78_s19 = int_to_ptr.vmem [resolvable:$true] %s77_s19 }
  0x39   :  { %s703_s1 = scalar_lea.hbm %s959_s2, 256 }
  0x3a   :  { %p704_p10 = scmp.ne.s32.totalorder %s959_s2, %s703_s1  ;;  %p707_p11 = scmp.lt.u32.totalorder %s703_s1, %s959_s2 }
  0x3c   :  { %p709_p12 = pnand %p707_p11, %p704_p10 }
  0x3e   :  { %712 = shalt.err (!%p709_p12)
}
  0x3f   :  { %s713_s0 = scalar_lea.vmem %s48_s17, 256  ;;  %p718_p0 = scmp.lt.s32.totalorder %s48_s17, %s48_s17 }
  0x40   :  { %p714_p13 = scmp.ne.s32.totalorder %s48_s17, %s713_s0  ;;  %p719_p1 = scmp.lt.s32.totalorder %s713_s0, %s713_s0 }
  0x42   :  { %p720_p2 = por %p719_p1, %p718_p0 }
  0x44   :  { %p721_p3 = pnand %p720_p2, %p714_p13 }
  0x46   :  { %724 = shalt.err (!%p721_p3)
}
  0x47   :  { %53 = dma.hbm_to_vmem [thread:$0]  %s959_s2, 256, %s48_s17, [#allocation7], %s780_s20, %s780_s20, %s781_s23  }
  0x48   :  { %s725_s30 = scalar_lea.hbm %s964_s7, 512 }
  0x49   :  { %p726_p4 = scmp.ne.s32.totalorder %s964_s7, %s725_s30  ;;  %p729_p5 = scmp.lt.u32.totalorder %s725_s30, %s964_s7 }
  0x4b   :  { %p731_p6 = pnand %p729_p5, %p726_p4 }
  0x4d   :  { %734 = shalt.err (!%p731_p6)
}
  0x4e   :  { %s735_s16 = scalar_lea.vmem %s78_s19, 512  ;;  %p740_p8 = scmp.lt.s32.totalorder %s78_s19, %s78_s19 }
  0x4f   :  { %p736_p7 = scmp.ne.s32.totalorder %s78_s19, %s735_s16  ;;  %p741_p9 = scmp.lt.s32.totalorder %s735_s16, %s735_s16 }
  0x51   :  { %p742_p10 = por %p741_p9, %p740_p8 }
  0x53   :  { %p743_p11 = pnand %p742_p10, %p736_p7 }
  0x55   :  { %746 = shalt.err (!%p743_p11)
}
  0x56   :  { %83 = dma.hbm_to_vmem [thread:$0]  %s964_s7, 512, %s78_s19, [#allocation10], %s780_s20, %s780_s20, %s781_s23  }
  0x57   :  { %769 = dma.done.wait [#allocation4], 128  }
  0x58   :  { %770 = vsyncadd [#allocation4], 4294967168 }
  0x59   :  { %771 = dma.done.wait [#allocation7], 384  }
  0x5a   :  { %772 = vsyncadd [#allocation7], 4294966912 }
  0x5b   :  { %773 = dma.done.wait [#allocation10], 1024  }
  0x5c   :  { %774 = vsyncadd [#allocation10], 4294966272  ;;  %v784_v1 = vmov 0.0|0.0   ;;  %v785_v2 = vmov 0.0   ;;  %vm786_vm0 = vmmov 0   ;;  %vm199_vm1 = vcmask 64512  }
  0x5d   :  { %609 = vmatprep.subr.bf16.mxu0 %v784_v1  ;;  %577 = vmatprep.subr.mxu1 %v785_v2  ;;  %v106_v3 = vld [vmem:[#allocation8] sm:$0xff]  ;;  %v107_v4 = vld [vmem:[#allocation8 + $0x8] sm:$0xff]  ;;  %v190_v7 = vld [vmem:[#allocation6] sm:$0xff]  ;;  %vm115_vm2 = vcmask 130048   ;;  %vm282_vm3 = vcmask 261120   ;;  %v787_v32 = vmov 0   ;;  %v445_v42 = vlaneseq }
  0x5e   :  { %579 = vmatprep.mubr.msk.f32.mxu1 %vm786_vm0, %v785_v2  ;;  %574 = vmatprep.mubr.msk.f32.mxu0 %vm786_vm0, %v785_v2  ;;  %v191_v5 = vld [vmem:[%s961_s4] sm:$0xff]  ;;  %v610_v6 = vpack.c.bf16 %v107_v4, %v106_v3  ;;  %v279_v9 = vld [vmem:[#allocation11 + $0x8] sm:$0xff]  ;;  %v280_v15 = vld [vmem:[#allocation11 + $0x10] sm:$0xff]  ;;  %s788_s1 = smov [#allocation12]   ;;  %vm525_vm4 = vcmask 57344  }
  0x5f   :  { %578 = vmatpush3.msra.mxu1 %v191_v5  ;;  %v278_v8 = vld [vmem:[#allocation11] sm:$0xff]  ;;  %v275_v11 = vld [vmem:[#allocation9 + $0x8] sm:$0xff]  ;;  %v281_v16 = vld [vmem:[#allocation11 + $0x18] sm:$0xff]  ;;  %636 = vset.pattern.permute.xlu0 %v787_v32  ;;  %v446_v43 = vshrl.u32 %v445_v42, 7  ;;  %s533_s24 = sshll.u32 %s788_s1, 4  ;;  %s534_s24 = int_to_ptr.vmem [resolvable:$true] %s533_s24 }
  0x60   :  { %580 = vmatmul.mubr.msk.f32.vlgmr.msra.gmra.mrb[0].mxu1 %vm199_vm1, %v190_v7  ;;  %612 = vmatprep.subr.bf16.mxu1 %v784_v1  ;;  %v274_v10 = vld [vmem:[#allocation9] sm:$0xff]  ;;  %v613_v13 = vpack.c.bf16 %v279_v9, %v278_v8  ;;  %v616_v17 = vpack.c.bf16 %v281_v16, %v280_v15  ;;  %v276_v18 = vld [vmem:[#allocation9 + $0x10] sm:$0xff]  ;;  %v277_v19 = vld [vmem:[#allocation9 + $0x18] sm:$0xff]  ;;  %s751_s25 = scalar_lea.vmem %s534_s24, 32  ;;  %p752_p13 = scmp.lt.s32.totalorder %s534_s24, %s534_s24 }
  0x61   :  { %611 = vmatpush3.bf16.msra.mxu0 %v610_v6  ;;  %v105_v12 = vld [vmem:[#allocation3] sm:$0xff]  ;;  %v619_v14 = vpack.c.bf16 %v275_v11, %v274_v10  ;;  %590 = vmatprep.mubr.msk.f32.mxu1 %vm786_vm0, %v785_v2  ;;  %v622_v20 = vpack.c.bf16 %v277_v19, %v276_v18  ;;  %v546_v21 = vld [vmem:[%s962_s5] ss:$0 sm:$0xff]  ;;  %v447_v44 = vsub.s32 0, %v446_v43 }
  0x62   :  { %618 = vmatprep.subr.bf16.mxu0 %v784_v1  ;;  %614 = vmatpush3.bf16.msra.mxu1 %v613_v13  ;;  %v544_v25 = vld [vmem:[%s960_s3] ss:$0 sm:$0xff] }
  0x63   :  { %615 = vmatprep.subr.bf16.mxu1 %v784_v1  ;;  %v439_v31 = vld [vmem:[#allocation2] sm:$0x1] }
  0x64   :  { %575 = vmatmul.mubr.msk.f32.vlgmr.msra.gmra.mrb[0].mxu0 %vm115_vm2, %v105_v12  ;;  %442 = vperm.xlu0 %636, %v439_v31   ;;  %v550_v36 = vld [vmem:[%s965_s8] ss:$0 sm:$0xff]  ;;  %s747_s8 = scalar_lea.vmem %s534_s24, 16 }
  0x65   :  { %620 = vmatpush3.bf16.msra.mxu0 %v619_v14  ;;  %601 = vmatprep.mubr.msk.f32.mxu0 %vm786_vm0, %v785_v2  ;;  %v438_v41 = vld [vmem:[%s966_s9] sm:$0x1]  ;;  %p748_p12 = scmp.ne.s32.totalorder %s534_s24, %s747_s8  ;;  %p753_p0 = scmp.lt.s32.totalorder %s751_s25, %s747_s8 }
  0x66   :  { %621 = vmatprep.subr.bf16.mxu0 %v784_v1  ;;  %617 = vmatpush3.bf16.msra.mxu1 %v616_v17 }
  0x67   :  { %604 = vmatprep.subr.mxu1 %v785_v2  ;;  %p754_p1 = por %p753_p0, %p752_p13 }
  0x69   :  { %623 = vmatpush3.bf16.msra.mxu0 %v622_v20  ;;  %p755_p2 = pnand %p754_p1, %p748_p12 }
  0xe3   :  { %v443_v45 = vpop.permute.xlu0 %442 }
  0xe4   :  { %v448_v46 = vrot.slane %v443_v45, %v447_v44 }
 0x133   :  { %v269_v22 = vpop.f32.mrb[0].mxu1 }
 0x134   :  { %v270_v23 = vadd.f32 %v546_v21, %v269_v22  ;;  %v581_v24 = vpop.f32.mrb[1].mxu1 }
 0x136   :  { %v273_v26 = vmax.f32 %v270_v23, 0.0 }
 0x137   :  { %v185_v27 = vpop.f32.mrb[0].mxu0 }
 0x138   :  { %v186_v28 = vadd.f32 %v544_v25, %v185_v27  ;;  %v576_v29 = vpop.f32.mrb[1].mxu0  ;;  %591 = vmatmul.mubr.msk.f32.vlgmr.msra.gmra.mrb[2].mxu1 %vm282_vm3, %v273_v26 }
 0x139   :  { %606 = vmatprep.mubr.msk.f32.mxu1 %vm786_vm0, %v785_v2 }
 0x13a   :  { %v189_v30 = vmax.f32 %v186_v28, 0.0 }
 0x13c   :  { %602 = vmatmul.mubr.msk.f32.vlgmr.msra.gmra.mrb[2].mxu0 %vm282_vm3, %v189_v30 }
 0x20b   :  { %v352_v33 = vpop.f32.mrb[2].mxu1 }
 0x20c   :  { %v592_v34 = vpop.f32.mrb[3].mxu1 }
 0x20f   :  { %v425_v35 = vpop.f32.mrb[2].mxu0 }
 0x210   :  { %v426_v37 = vadd.f32 %v425_v35, %v352_v33  ;;  %v603_v38 = vpop.f32.mrb[3].mxu0 }
 0x212   :  { %v436_v39 = vadd.f32 %v550_v36, %v426_v37 }
 0x214   :  { %v437_v40 = vmax.f32 %v436_v39, 0.0 }
 0x216   :  { %605 = vmatpush3.xpose.msk.msra.mxu1 %vm282_vm3, %v437_v40 }
 0x219   :  { %607 = vmatmul.mubr.msk.f32.vlgmr.msra.gmra.mrb[4].mxu1 %vm282_vm3, %v438_v41 }
 0x2ec   :  { %v521_v47 = vpop.f32.mrb[4].mxu1 }
 0x2ed   :  { %v522_v48 = vadd.f32 %v521_v47, %v448_v46  ;;  %v608_v49 = vpop.f32.mrb[5].mxu1 }
 0x2ef   :  { %526 = vst.msk [vmem:[#allocation12] sm:$0x1] %vm525_vm4, %v522_v48 }
 0x2f0   :  { %758 = shalt.err (!%p755_p2)
}
 0x2f1   :  { %s759_s27 = scalar_lea.hbm %s968_s11, 16 }
 0x2f2   :  { %p760_p3 = scmp.ne.s32.totalorder %s968_s11, %s759_s27  ;;  %p763_p4 = scmp.lt.u32.totalorder %s759_s27, %s968_s11 }
 0x2f4   :  { %p765_p5 = pnand %p763_p4, %p760_p3 }
 0x2f6   :  { %768 = shalt.err (!%p765_p5)
}
 0x2f7   :  { %536 = dma.vmem_to_hbm [thread:$0]  %s534_s24, 16, %s968_s11, [#allocation5]  }
 0x2f8   :  { %775 = dma.done.wait [#allocation5], 16  }
 0x2f9   :  { %776 = vsyncadd [#allocation5], 4294967280 }
 0x2fa   :  { %540 = vsyncpa [#allocation4], 1 }
 0x2fb   :  { %541 = vsyncpa [#allocation7], 1 }
 0x2fc   :  { %542 = vsyncpa [#allocation10], 1 }
 0x2fd   :  { %543 = vsyncpa [#allocation5], 1 }

</bundles_post_ra>
